<compile_context>
chip_gen: v7x
topology: tpu7x:2x2x1
jax: 0.10.0
libtpu: 0.0.40
codegen_flags: <defaults>
</compile_context>

<pallas_src>
import jax
import jax.numpy as jnp
from jax.experimental import pallas as pl
from jax.experimental.pallas import tpu as pltpu

MAX_BLOCK = 512  # max batch tile: (512,128) f32 hidden slab == full vreg file


def pgn_kernel(x_ref, w1p_ref, w2p_ref, out_ref):
    # Hoist the small loads so the vld slots overlap the FMA work.
    x = x_ref[...]                      # (Bt, S)   f32
    w1p = w1p_ref[...]                  # (S+1, H)  f32  (row S is b1)

    s_dim = x.shape[1]
    h_dim = w1p.shape[1]

    # ---- Layer 1 on the VPU ------------------------------------------------
    # S is tiny (4 for CartPole): an unrolled sum of broadcast FMAs over the
    # (Bt, H) hidden slab beats pushing a K=4 operand through the MXU.
    h = w1p[s_dim:s_dim + 1, :]                        # bias row, broadcasts
    for k in range(s_dim):
        h = h + x[:, k:k + 1] * w1p[k:k + 1, :]        # (Bt,1)*(1,H) -> (Bt,H)
    h = jnp.maximum(h, 0.0)                            # ReLU

    # ---- Layer 2 on the MXU (contraction over H = 128) ----------------------
    # bf16 operands, f32 accumulation: native on v5e/v6e/v7x MXUs, precision
    # loss irrelevant for 2-logit policy outputs.
    w2 = w2p_ref[:h_dim, :].astype(jnp.bfloat16)       # (H, A)
    b2 = w2p_ref[h_dim:h_dim + 1, :]                   # (1, A) f32
    o = jnp.dot(h.astype(jnp.bfloat16), w2,
                preferred_element_type=jnp.float32) + b2
    out_ref[...] = o


def _cost_estimate(B, S, H, A):
    flops = 2 * B * (S * H + H * A)
    bytes_accessed = 4 * (B * S + (S + 1) * H + (H + 1) * A + B * A)
    return pl.CostEstimate(flops=flops, transcendentals=0,
                           bytes_accessed=bytes_accessed)


def _pgn_call_single(x, w1p, w2p):
    """No-grid path: everything is one small VMEM-resident block."""
    B, S = x.shape
    H = w1p.shape[1]
    A = w2p.shape[1]
    vmem = pl.BlockSpec(memory_space=pltpu.MemorySpace.VMEM)
    return pl.pallas_call(
        pgn_kernel,
        out_shape=jax.ShapeDtypeStruct((B, A), jnp.float32),
        in_specs=[vmem, vmem, vmem],
        out_specs=vmem,
        cost_estimate=_cost_estimate(B, S, H, A),
    )(x, w1p, w2p)


def _pgn_call_batched(x, w1p, w2p, block_b):
    """Gridded path for stacked rollout states: weights stay resident across
    grid steps; batch axis is 'parallel' so v7x's two TCs split it.  The grid
    is pl.cdiv(B, block_b): the partial last tile is masked on write, so no
    wrapper-side pad/slice of x or out is needed."""
    B, S = x.shape
    H = w1p.shape[1]
    A = w2p.shape[1]
    return pl.pallas_call(
        pgn_kernel,
        out_shape=jax.ShapeDtypeStruct((B, A), jnp.float32),
        grid_spec=pl.GridSpec(
            grid=(pl.cdiv(B, block_b),),
            in_specs=[
                pl.BlockSpec((block_b, S), lambda i: (i, 0)),
                pl.BlockSpec((S + 1, H), lambda i: (0, 0)),
                pl.BlockSpec((H + 1, A), lambda i: (0, 0)),
            ],
            out_specs=pl.BlockSpec((block_b, A), lambda i: (i, 0)),
        ),
        compiler_params=pltpu.CompilerParams(
            dimension_semantics=("parallel",),
        ),
        cost_estimate=_cost_estimate(B, S, H, A),
    )(x, w1p, w2p)


def _round_up(n, m):
    return ((n + m - 1) // m) * m


def pgn_forward(x, w1, b1, w2, b2):
    """x: (B, num_states) f32; returns (B, num_actions) f32 logits."""
    B, S = x.shape
    H = w1.shape[1]
    A = w2.shape[1]

    # Pack biases into the weight slabs -> 3 input DMAs per call instead of 5.
    w1p = jnp.concatenate([w1, b1.reshape(1, H)], axis=0)   # (S+1, H)
    w2p = jnp.concatenate([w2, b2.reshape(1, A)], axis=0)   # (H+1, A)

    if B <= MAX_BLOCK:
        # Per-env-step path: single VMEM-resident block, no pipeline.
        return _pgn_call_single(x, w1p, w2p)

    # Large rollout batches: choose a tile that (a) stays under the vreg
    # budget for the (block_b, 128) hidden slab and (b) yields balanced,
    # non-degenerate tiles for v7x's two TensorCores.
    block_b = min(MAX_BLOCK, _round_up(pl.cdiv(B, 2), 8))
    return _pgn_call_batched(x, w1p, w2p, block_b)


def reference_forward(x, w1, b1, w2, b2):
    h = jnp.maximum(x @ w1 + b1, 0.0)
    return h @ w2 + b2


if __name__ == "__main__":
    # CartPole-like shapes: num_states=4, num_actions=2, hidden=128 (fixed by module).
    num_states, num_actions, hidden = 4, 2, 128

    key = jax.random.PRNGKey(0)
    kx, k1, k2, k3, k4, kx2 = jax.random.split(key, 6)

    # Deterministic synthetic parameters (stored as (in, out) == PyTorch W.T).
    w1 = jax.random.normal(k1, (num_states, hidden), dtype=jnp.float32) * 0.1
    b1 = jax.random.normal(k2, (hidden,), dtype=jnp.float32) * 0.1
    w2 = jax.random.normal(k3, (hidden, num_actions), dtype=jnp.float32) * 0.1
    b2 = jax.random.normal(k4, (num_actions,), dtype=jnp.float32) * 0.1

    # Tolerance is loosened slightly because layer 2 uses bf16 MXU operands.
    atol = rtol = 2e-2

    # Small batch -> no-grid VMEM-resident path (single rollout step scale).
    x_small = jax.random.normal(kx, (8, num_states), dtype=jnp.float32)
    out_small = jax.block_until_ready(pgn_forward(x_small, w1, b1, w2, b2))
    ref_small = reference_forward(x_small, w1, b1, w2, b2)
    assert out_small.shape == (8, num_actions)
    assert jnp.allclose(out_small, ref_small, atol=atol, rtol=rtol)

    # Larger batch of stacked rollout states -> gridded, weight-resident path.
    # 600 is deliberately not a multiple of the tile to exercise the masked
    # partial last block (no wrapper pad/slice) and v7x tile balancing.
    x_big = jax.random.normal(kx2, (600, num_states), dtype=jnp.float32)
    out_big = jax.block_until_ready(pgn_forward(x_big, w1, b1, w2, b2))
    ref_big = reference_forward(x_big, w1, b1, w2, b2)
    assert out_big.shape == (600, num_actions)
    assert jnp.allclose(out_big, ref_big, atol=atol, rtol=rtol)

    print("KERNEL_OK")
</pallas_src>

<mosaic_0001>
module attributes {stable_mosaic.version = 11 : i64} {
  func.func @pgn_kernel(%arg0: memref<8x4xf32, #tpu.memory_space<vmem>>, %arg1: memref<5x128xf32, #tpu.memory_space<vmem>>, %arg2: memref<129x2xf32, #tpu.memory_space<vmem>>, %arg3: memref<8x2xf32, #tpu.memory_space<vmem>>) attributes {dimension_semantics = [], scalar_prefetch = 0 : i64, scratch_operands = 0 : i64, tpu.core_type = #tpu.core_type<tc>} {
    %c0 = arith.constant 0 : index
    %c0_0 = arith.constant 0 : index
    %0 = vector.load %arg0[%c0, %c0_0] : memref<8x4xf32, #tpu.memory_space<vmem>>, vector<8x4xf32>
    %c0_1 = arith.constant 0 : index
    %c0_2 = arith.constant 0 : index
    %1 = vector.load %arg1[%c0_1, %c0_2] : memref<5x128xf32, #tpu.memory_space<vmem>>, vector<5x128xf32>
    %2 = vector.extract_strided_slice %1 {offsets = [4, 0], sizes = [1, 128], strides = [1, 1]} : vector<5x128xf32> to vector<1x128xf32>
    %3 = vector.extract_strided_slice %0 {offsets = [0, 0], sizes = [8, 1], strides = [1, 1]} : vector<8x4xf32> to vector<8x1xf32>
    %4 = vector.extract_strided_slice %1 {offsets = [0, 0], sizes = [1, 128], strides = [1, 1]} : vector<5x128xf32> to vector<1x128xf32>
    %5 = vector.broadcast %3 : vector<8x1xf32> to vector<8x128xf32>
    %6 = vector.broadcast %4 : vector<1x128xf32> to vector<8x128xf32>
    %7 = arith.mulf %5, %6 : vector<8x128xf32>
    %8 = vector.broadcast %2 : vector<1x128xf32> to vector<8x128xf32>
    %9 = arith.addf %8, %7 : vector<8x128xf32>
    %10 = vector.extract_strided_slice %0 {offsets = [0, 1], sizes = [8, 1], strides = [1, 1]} : vector<8x4xf32> to vector<8x1xf32>
    %11 = vector.extract_strided_slice %1 {offsets = [1, 0], sizes = [1, 128], strides = [1, 1]} : vector<5x128xf32> to vector<1x128xf32>
    %12 = vector.broadcast %10 : vector<8x1xf32> to vector<8x128xf32>
    %13 = vector.broadcast %11 : vector<1x128xf32> to vector<8x128xf32>
    %14 = arith.mulf %12, %13 : vector<8x128xf32>
    %15 = arith.addf %9, %14 : vector<8x128xf32>
    %16 = vector.extract_strided_slice %0 {offsets = [0, 2], sizes = [8, 1], strides = [1, 1]} : vector<8x4xf32> to vector<8x1xf32>
    %17 = vector.extract_strided_slice %1 {offsets = [2, 0], sizes = [1, 128], strides = [1, 1]} : vector<5x128xf32> to vector<1x128xf32>
    %18 = vector.broadcast %16 : vector<8x1xf32> to vector<8x128xf32>
    %19 = vector.broadcast %17 : vector<1x128xf32> to vector<8x128xf32>
    %20 = arith.mulf %18, %19 : vector<8x128xf32>
    %21 = arith.addf %15, %20 : vector<8x128xf32>
    %22 = vector.extract_strided_slice %0 {offsets = [0, 3], sizes = [8, 1], strides = [1, 1]} : vector<8x4xf32> to vector<8x1xf32>
    %23 = vector.extract_strided_slice %1 {offsets = [3, 0], sizes = [1, 128], strides = [1, 1]} : vector<5x128xf32> to vector<1x128xf32>
    %24 = vector.broadcast %22 : vector<8x1xf32> to vector<8x128xf32>
    %25 = vector.broadcast %23 : vector<1x128xf32> to vector<8x128xf32>
    %26 = arith.mulf %24, %25 : vector<8x128xf32>
    %27 = arith.addf %21, %26 : vector<8x128xf32>
    %cst = arith.constant 0.000000e+00 : f32
    %28 = vector.broadcast %cst : f32 to vector<8x128xf32>
    %29 = arith.maximumf %27, %28 : vector<8x128xf32>
    %c0_3 = arith.constant 0 : index
    %c0_4 = arith.constant 0 : index
    %30 = vector.load %arg2[%c0_3, %c0_4] : memref<129x2xf32, #tpu.memory_space<vmem>>, vector<128x2xf32>
    %31 = arith.truncf %30 : vector<128x2xf32> to vector<128x2xbf16>
    %c128 = arith.constant 128 : index
    %c0_5 = arith.constant 0 : index
    %32 = vector.load %arg2[%c128, %c0_5] : memref<129x2xf32, #tpu.memory_space<vmem>>, vector<1x2xf32>
    %33 = arith.truncf %29 : vector<8x128xf32> to vector<8x128xbf16>
    %cst_6 = arith.constant dense<0.000000e+00> : vector<8x2xf32>
    %34 = tpu.matmul %33, %31, %cst_6 {dimension_numbers = #tpu.dot_dimension_numbers<[1], [0], [0], [1], [0, 0, 1, 1], [], []>} : vector<8x128xbf16>, vector<128x2xbf16>, vector<8x2xf32> -> vector<8x2xf32>
    %35 = vector.broadcast %32 : vector<1x2xf32> to vector<8x2xf32>
    %36 = arith.addf %34, %35 : vector<8x2xf32>
    %c0_7 = arith.constant 0 : index
    %c0_8 = arith.constant 0 : index
    %37 = vector.load %arg3[%c0_7, %c0_8] : memref<8x2xf32, #tpu.memory_space<vmem>>, vector<8x2xf32>
    tpu.vector_store %arg3[%c0_7, %c0_8], %36 {strides = array<i32>} : memref<8x2xf32, #tpu.memory_space<vmem>>, vector<8x2xf32>,
    return
  }
}

</mosaic_0001>

<bundles_post_ra>
// kernel: tpu_custom_call.1
= control target key start
LH: loop header
LB: loop body
LE: loop exit
PB: predicated region body
PF: predicated region fallthrough
CT: control target
= control target key end

     0   :  { %v180_v0 = vmov 0   ;;  %v181_v2 = vmov 2   ;;  %v182_v8 = vmov 0.0   ;;  %v183_v12 = vmov 1   ;;  %s266_s0 = inlined_call_operand.vmem [shape: f32[8,4], index: 0, kind: input, shape index: {}]   ;;  %s267_s2 = inlined_call_operand.vmem [shape: f32[129,2], index: 2, kind: input, shape index: {}]   ;;  %s268_s1 = inlined_call_operand.vmem [shape: f32[5,128], index: 1, kind: input, shape index: {}]   ;;  %s269_s3 = inlined_call_operand.vmem [shape: f32[8,2], index: 3, kind: output, shape index: {}]  }
   0x1   :  { %175 = vset.pattern.permute.xlu0 %v180_v0  ;;  %v15_v1 = vld [vmem:[%s266_s0] sm:$0xff]  ;;  %177 = vset.pattern.permute.xlu1 %v181_v2  ;;  %v64_v4 = vld [vmem:[%s267_s2 + $0x8] sm:$0xff]  ;;  %v65_v6 = vld [vmem:[%s267_s2 + $0x10] sm:$0xff]  ;;  %v184_v13 = vmov 3   ;;  %vm185_vm0 = vmmov 0   ;;  %v22_v30 = vlaneseq  ;;  %vm133_vm1 = vcmask 15360  }
   0x2   :  { %v63_v3 = vld [vmem:[%s267_s2] sm:$0xff]  ;;  %19 = vperm.xlu0 %175, %v15_v1   ;;  %43 = vperm.xlu1 %177, %v15_v1   ;;  %v66_v7 = vld [vmem:[%s267_s2 + $0x18] sm:$0xff]  ;;  %v68_v11 = vld [vmem:[%s267_s2 + $0x28] sm:$0xff] }
   0x3   :  { %v79_v5 = vpack.c.bf16 %v64_v4, %v63_v3  ;;  %149 = vmatprep.subr.bf16.mxu0 %v182_v8  ;;  %v80_v9 = vpack.c.bf16 %v66_v7, %v65_v6  ;;  %v67_v10 = vld [vmem:[%s267_s2 + $0x20] sm:$0xff]  ;;  %v69_v15 = vld [vmem:[%s267_s2 + $0x30] sm:$0xff]  ;;  %v70_v16 = vld [vmem:[%s267_s2 + $0x38] sm:$0xff]  ;;  %165 = vmatprep.mubr.msk.bf16.mxu0 %vm185_vm0, %v182_v8  ;;  %v23_v31 = vshrl.u32 %v22_v30, 7 }
   0x4   :  { %v81_v14 = vpack.c.bf16 %v68_v11, %v67_v10  ;;  %v82_v17 = vpack.c.bf16 %v70_v16, %v69_v15  ;;  %v71_v18 = vld [vmem:[%s267_s2 + $0x40] sm:$0xff]  ;;  %v72_v19 = vld [vmem:[%s267_s2 + $0x48] sm:$0xff]  ;;  %v73_v21 = vld [vmem:[%s267_s2 + $0x50] sm:$0xff] }
   0x5   :  { %150 = vmatpush3.bf16.msra.mxu0 %v79_v5  ;;  %v83_v20 = vpack.c.bf16 %v72_v19, %v71_v18  ;;  %v74_v22 = vld [vmem:[%s267_s2 + $0x58] sm:$0xff]  ;;  %v75_v24 = vld [vmem:[%s267_s2 + $0x60] sm:$0xff]  ;;  %v76_v25 = vld [vmem:[%s267_s2 + $0x68] sm:$0xff]  ;;  %v24_v32 = vsub.s32 0, %v23_v31  ;;  %v29_v35 = vsub.s32 4, %v23_v31  ;;  %v38_v36 = vsub.s32 1, %v23_v31 }
   0x6   :  { %151 = vmatprep.subr.bf16.mxu0 %v182_v8  ;;  %176 = vset.pattern.permute.xlu0 %v183_v12  ;;  %v84_v23 = vpack.c.bf16 %v74_v22, %v73_v21  ;;  %v85_v26 = vpack.c.bf16 %v76_v25, %v75_v24  ;;  %v77_v27 = vld [vmem:[%s267_s2 + $0x70] sm:$0xff]  ;;  %v78_v28 = vld [vmem:[%s267_s2 + $0x78] sm:$0xff]  ;;  %v16_v33 = vld [vmem:[%s268_s1] sm:$0x1f]  ;;  %v48_v38 = vsub.s32 2, %v23_v31  ;;  %v58_v40 = vsub.s32 3, %v23_v31 }
   0x7   :  { %178 = vset.pattern.permute.xlu1 %v184_v13  ;;  %33 = vperm.xlu0 %176, %v15_v1   ;;  %v86_v29 = vpack.c.bf16 %v78_v28, %v77_v27  ;;  %v25_v34 = vrot.slane %v16_v33, %v24_v32  ;;  %v30_v41 = vrot.slane %v16_v33, %v29_v35  ;;  %v139_v57 = vld [vmem:[%s267_s2 + $0x80] ss:$0 sm:$0xff] }
   0x8   :  { %53 = vperm.xlu1 %178, %v15_v1   ;;  %v39_v43 = vrot.slane %v16_v33, %v38_v36  ;;  %v49_v44 = vrot.slane %v16_v33, %v48_v38  ;;  %v59_v45 = vrot.slane %v16_v33, %v58_v40 }
   0x9   :  { %152 = vmatpush3.bf16.msra.mxu0 %v80_v9 }
   0xa   :  { %153 = vmatprep.subr.bf16.mxu0 %v182_v8 }
   0xb   :  { %179 = vset.pattern.permute.xlu0 %v184_v13 }
   0xd   :  { %154 = vmatpush3.bf16.msra.mxu0 %v81_v14 }
   0xe   :  { %155 = vmatprep.subr.bf16.mxu0 %v182_v8 }
  0x11   :  { %156 = vmatpush3.bf16.msra.mxu0 %v82_v17 }
  0x12   :  { %157 = vmatprep.subr.bf16.mxu0 %v182_v8 }
  0x15   :  { %158 = vmatpush3.bf16.msra.mxu0 %v83_v20 }
  0x16   :  { %159 = vmatprep.subr.bf16.mxu0 %v182_v8 }
  0x19   :  { %160 = vmatpush3.bf16.msra.mxu0 %v84_v23 }
  0x1a   :  { %161 = vmatprep.subr.bf16.mxu0 %v182_v8 }
  0x1d   :  { %162 = vmatpush3.bf16.msra.mxu0 %v85_v26 }
  0x1e   :  { %163 = vmatprep.subr.bf16.mxu0 %v182_v8 }
  0x21   :  { %164 = vmatpush3.bf16.msra.mxu0 %v86_v29 }
  0x81   :  { %v20_v37 = vpop.permute.xlu0 %19  ;;  %v44_v39 = vpop.permute.xlu1 %43 }
  0x82   :  { %v26_v42 = vmul.f32 %v25_v34, %v20_v37  ;;  %v50_v50 = vmul.f32 %v49_v44, %v44_v39 }
  0x84   :  { %v31_v48 = vadd.f32 %v30_v41, %v26_v42 }
  0x86   :  { %v34_v46 = vpop.permute.xlu0 %33 }
  0x87   :  { %v54_v47 = vpop.permute.xlu1 %53  ;;  %v40_v49 = vmul.f32 %v39_v43, %v34_v46 }
  0x88   :  { %v60_v52 = vmul.f32 %v59_v45, %v54_v47 }
  0x89   :  { %v41_v51 = vadd.f32 %v40_v49, %v31_v48 }
  0x8b   :  { %v51_v53 = vadd.f32 %v50_v50, %v41_v51 }
  0x8d   :  { %v61_v54 = vadd.f32 %v60_v52, %v51_v53 }
  0x8f   :  { %v62_v55 = vmax.f32 %v61_v54, 0.0 }
  0x91   :  { %v88_v56 = vpack.c.bf16 %v62_v55, %v62_v55 }
  0x93   :  { %166 = vmatmul.mubr.bf16.vlgmr.msra.gmra.mrb[0].mxu0 %v88_v56 }
 0x166   :  { %v127_v58 = vpop.f32.mrb[0].mxu0 }
 0x167   :  { %v128_v59 = vadd.f32 %v139_v57, %v127_v58  ;;  %v167_v60 = vpop.f32.mrb[1].mxu0 }
 0x168   :  { %v130_v61 = vpop.f32.mrb[2].mxu0 }
 0x169   :  { %134 = vst.msk [vmem:[%s269_s3] sm:$0xff] %vm133_vm1, %v128_v59  ;;  %v168_v62 = vpop.f32.mrb[3].mxu0 }

</bundles_post_ra>
